<compile_context>
chip_gen: v7x
topology: tpu7x:2x2x1
jax: 0.10.0
libtpu: 0.0.40
codegen_flags: <defaults>
</compile_context>

<pallas_src>
import functools

import numpy as np
import jax
import jax.numpy as jnp
from jax.experimental import pallas as pl
from jax.experimental.pallas import tpu as pltpu

LANE = 128


# ----------------------------------------------------------------------------
# Constructor logic of conv_2d.__init__ (kernel / pool size arithmetic)
# ----------------------------------------------------------------------------
def conv2d_layer_config(shape, size):
    shape = list(shape)
    if len(shape) == 3:
        shape.insert(1, 1)
    x_shape1 = np.array(shape[-3:-1])
    x_shape = x_shape1 // size
    x_shape[x_shape <= 1] = 2
    x_shape = np.minimum(x_shape, x_shape1)
    kernels = [int(k) for k in x_shape.tolist()]
    x_shape = x_shape // 2
    x_shape[x_shape == 0] = 1
    pool_size = [int(p) for p in x_shape.tolist()]
    return shape, kernels[-2:], pool_size[-2:]


# ----------------------------------------------------------------------------
# Wrapper-side layout plumbing (no compute): im2col + constant pool matrix
# ----------------------------------------------------------------------------
def im2col(x, kh, kw):
    """x: (B, C, H, W) -> (B, HO*WO, C*kh*kw); column order (c, di, dj)."""
    B, C, H, W = x.shape
    ho, wo = H - kh + 1, W - kw + 1
    cols = []
    for c in range(C):
        for di in range(kh):
            for dj in range(kw):
                cols.append(x[:, c, di:di + ho, dj:dj + wo])   # (B, ho, wo)
    pat = jnp.stack(cols, axis=-1)                              # (B, ho, wo, K)
    return pat.reshape(B, ho * wo, C * kh * kw)


def build_pool_matrix(ho, wo, ph, pw):
    """Banded (HOp*WOp, HO*WO) matrix implementing AvgPool2d((ph,pw), stride=1)."""
    hop, wop = ho - ph + 1, wo - pw + 1
    pmat = np.zeros((hop * wop, ho * wo), np.float32)
    inv = 1.0 / float(ph * pw)
    for i in range(hop):
        for j in range(wop):
            for pi in range(ph):
                for pj in range(pw):
                    pmat[i * wop + j, (i + pi) * wo + (j + pj)] = inv
    return jnp.asarray(pmat)


# ----------------------------------------------------------------------------
# Fused Pallas kernel: conv (matmul) + bias + ReLU + avg-pool (matmul)
# ----------------------------------------------------------------------------
def _conv_act_pool_kernel(pat_ref, w_ref, b_ref, pool_ref, o_ref):
    # pat_ref : (1, M, K)    one image's im2col patches
    # w_ref   : (K, Fp)      conv weight, filters zero-padded to a lane multiple
    # b_ref   : (1, Fp)      conv bias (zero-padded)
    # pool_ref: (Mo, M)      banded stride-1 average-pool matrix
    # o_ref   : (1, Mo, Fp)
    conv = jnp.dot(pat_ref[0], w_ref[...], preferred_element_type=jnp.float32)
    conv = jnp.maximum(conv + b_ref[...], 0.0)          # bias + ReLU (VPU)
    o_ref[0] = jnp.dot(pool_ref[...], conv,             # avg pool (MXU)
                       preferred_element_type=jnp.float32)


def conv_2d_forward(x, w, b, *, kernels, pool_size, act="relu"):
    """Pallas forward of conv_2d: pool(act(conv(x))), padding='valid'."""
    assert act == "relu"  # TODO(synk): other act_funcs (elu/prelu/...) not wired.
    if x.ndim == 3:       # matches the torch.unsqueeze(x, dim=1) branch
        x = x[:, None]
    B, C, H, W = x.shape
    kh, kw = kernels
    ph, pw = pool_size
    F = w.shape[0]
    ho, wo = H - kh + 1, W - kw + 1
    hop, wop = ho - ph + 1, wo - pw + 1
    M, Mo, K = ho * wo, hop * wop, C * kh * kw
    Fp = ((F + LANE - 1) // LANE) * LANE                 # lane-dense output width

    pat = im2col(x, kh, kw)                              # (B, M, K)
    w2 = jnp.transpose(w.reshape(F, K))                  # (K, F), same (c,di,dj) order
    w2 = jnp.pad(w2, ((0, 0), (0, Fp - F)))              # (K, Fp)
    b2 = jnp.pad(b.reshape(1, F), ((0, 0), (0, Fp - F))) # (1, Fp)
    pool_mat = build_pool_matrix(ho, wo, ph, pw)         # (Mo, M)

    out = pl.pallas_call(
        _conv_act_pool_kernel,
        grid=(B,),
        in_specs=[
            pl.BlockSpec((1, M, K), lambda i: (i, 0, 0)),
            pl.BlockSpec((K, Fp), lambda i: (0, 0)),
            pl.BlockSpec((1, Fp), lambda i: (0, 0)),
            pl.BlockSpec((Mo, M), lambda i: (0, 0)),
        ],
        out_specs=pl.BlockSpec((1, Mo, Fp), lambda i: (i, 0, 0)),
        out_shape=jax.ShapeDtypeStruct((B, Mo, Fp), jnp.float32),
        compiler_params=pltpu.CompilerParams(
            dimension_semantics=("parallel",)),
    )(pat, w2, b2, pool_mat)

    # Strip lane padding, restore NCHW (what the PyTorch layer returns).
    out = out[:, :, :F].reshape(B, hop, wop, F)
    return jnp.transpose(out, (0, 3, 1, 2))              # (B, F, HOp, WOp)


# ----------------------------------------------------------------------------
# Pure-XLA reference (independent path) for a sanity check
# ----------------------------------------------------------------------------
def conv_2d_reference(x, w, b, *, kernels, pool_size):
    ph, pw = pool_size
    conv = jax.lax.conv_general_dilated(
        x, w, window_strides=(1, 1), padding="VALID",
        dimension_numbers=("NCHW", "OIHW", "NCHW"))
    conv = jnp.maximum(conv + b.reshape(1, -1, 1, 1), 0.0)
    summed = jax.lax.reduce_window(
        conv, 0.0, jax.lax.add, (1, 1, ph, pw), (1, 1, 1, 1), "VALID")
    return summed / float(ph * pw)


if __name__ == "__main__":
    B, C, H, W = 2, 4, 16, 16
    SIZE = 2
    params = {"act_func": "relu", "filters": 32}

    _, kernels, pool_size = conv2d_layer_config([B, C, H, W], SIZE)
    F = int(params["filters"])
    kh, kw = kernels

    key = jax.random.PRNGKey(0)
    kx, kw_, kb = jax.random.split(key, 3)
    x = jax.random.uniform(kx, (B, C, H, W), dtype=jnp.float32)
    bound = 1.0 / float(C * kh * kw) ** 0.5              # nn.Conv2d default init range
    w = jax.random.uniform(kw_, (F, C, kh, kw), jnp.float32, -bound, bound)
    b = jax.random.uniform(kb, (F,), jnp.float32, -bound, bound)

    fwd = jax.jit(functools.partial(conv_2d_forward,
                                    kernels=tuple(kernels),
                                    pool_size=tuple(pool_size)))
    out = jax.block_until_ready(fwd(x, w, b))

    hop = (H - kh + 1) - pool_size[0] + 1
    wop = (W - kw + 1) - pool_size[1] + 1
    assert out.shape == (B, F, hop, wop), out.shape
    assert bool(jnp.all(jnp.isfinite(out)))

    ref = conv_2d_reference(x, w, b, kernels=tuple(kernels),
                            pool_size=tuple(pool_size))
    max_err = float(jnp.max(jnp.abs(out - ref)))
    assert jnp.allclose(out, ref, atol=5e-2, rtol=5e-2), max_err

    print("KERNEL_OK")
</pallas_src>

<mosaic_0001>
module attributes {stable_mosaic.version = 11 : i64} {
  func.func @_conv_act_pool_kernel(%arg0: i32, %arg1: memref<1x135x64xf32, #tpu.memory_space<vmem>>, %arg2: memref<64x128xf32, #tpu.memory_space<vmem>>, %arg3: memref<1x128xf32, #tpu.memory_space<vmem>>, %arg4: memref<90x135xf32, #tpu.memory_space<vmem>>, %arg5: memref<1x90x128xf32, #tpu.memory_space<vmem>>) attributes {dimension_semantics = [#tpu.dimension_semantics<parallel>], iteration_bounds = array<i64: 2>, scalar_prefetch = 0 : i64, scratch_operands = 0 : i64, tpu.core_type = #tpu.core_type<tc>, window_params = [{transform_indices = @transform_0, window_bounds = array<i64: 1, 135, 64>}, {pipeline_mode = #tpu.pipeline_mode<synchronous>, transform_indices = @transform_1, window_bounds = array<i64: 64, 128>}, {pipeline_mode = #tpu.pipeline_mode<synchronous>, transform_indices = @transform_2, window_bounds = array<i64: 1, 128>}, {pipeline_mode = #tpu.pipeline_mode<synchronous>, transform_indices = @transform_3, window_bounds = array<i64: 90, 135>}, {transform_indices = @transform_4, window_bounds = array<i64: 1, 90, 128>}]} {
    %c0 = arith.constant 0 : index
    %c0_0 = arith.constant 0 : index
    %c0_1 = arith.constant 0 : index
    %0 = vector.load %arg1[%c0, %c0_0, %c0_1] : memref<1x135x64xf32, #tpu.memory_space<vmem>>, vector<1x135x64xf32>
    %1 = vector.shape_cast %0 : vector<1x135x64xf32> to vector<135x64xf32>
    %c0_2 = arith.constant 0 : index
    %c0_3 = arith.constant 0 : index
    %2 = vector.load %arg2[%c0_2, %c0_3] : memref<64x128xf32, #tpu.memory_space<vmem>>, vector<64x128xf32>
    %cst = arith.constant dense<0.000000e+00> : vector<135x128xf32>
    %3 = tpu.matmul %1, %2, %cst {dimension_numbers = #tpu.dot_dimension_numbers<[1], [0], [0], [1], [0, 0, 1, 1], [], []>} : vector<135x64xf32>, vector<64x128xf32>, vector<135x128xf32> -> vector<135x128xf32>
    %c0_4 = arith.constant 0 : index
    %c0_5 = arith.constant 0 : index
    %4 = vector.load %arg3[%c0_4, %c0_5] : memref<1x128xf32, #tpu.memory_space<vmem>>, vector<1x128xf32>
    %5 = vector.broadcast %4 : vector<1x128xf32> to vector<135x128xf32>
    %6 = arith.addf %3, %5 : vector<135x128xf32>
    %cst_6 = arith.constant 0.000000e+00 : f32
    %7 = vector.broadcast %cst_6 : f32 to vector<135x128xf32>
    %8 = arith.maximumf %6, %7 : vector<135x128xf32>
    %c0_7 = arith.constant 0 : index
    %c0_8 = arith.constant 0 : index
    %9 = vector.load %arg4[%c0_7, %c0_8] : memref<90x135xf32, #tpu.memory_space<vmem>>, vector<90x135xf32>
    %cst_9 = arith.constant dense<0.000000e+00> : vector<90x128xf32>
    %10 = tpu.matmul %9, %8, %cst_9 {dimension_numbers = #tpu.dot_dimension_numbers<[1], [0], [0], [1], [0, 0, 1, 1], [], []>} : vector<90x135xf32>, vector<135x128xf32>, vector<90x128xf32> -> vector<90x128xf32>
    %c0_10 = arith.constant 0 : index
    %c0_11 = arith.constant 0 : index
    %c0_12 = arith.constant 0 : index
    %11 = vector.load %arg5[%c0_10, %c0_11, %c0_12] : memref<1x90x128xf32, #tpu.memory_space<vmem>>, vector<1x90x128xf32>
    %12 = vector.shape_cast %11 : vector<1x90x128xf32> to vector<90x128xf32>
    %13 = vector.shape_cast %10 : vector<90x128xf32> to vector<1x90x128xf32>
    tpu.vector_store %arg5[%c0_10, %c0_11, %c0_12], %13 {strides = array<i32>} : memref<1x90x128xf32, #tpu.memory_space<vmem>>, vector<1x90x128xf32>,
    return
  }
  func.func @transform_0(%arg0: i32) -> (i32, i32, i32) {
    %c0_i32 = arith.constant 0 : i32
    %c0_i32_0 = arith.constant 0 : i32
    %c0_i32_1 = arith.constant 0 : i32
    return %arg0, %c0_i32, %c0_i32_0 : i32, i32, i32
  }
  func.func @transform_1(%arg0: i32) -> (i32, i32) {
    %c0_i32 = arith.constant 0 : i32
    %c0_i32_0 = arith.constant 0 : i32
    %c0_i32_1 = arith.constant 0 : i32
    return %c0_i32, %c0_i32_0 : i32, i32
  }
  func.func @transform_2(%arg0: i32) -> (i32, i32) {
    %c0_i32 = arith.constant 0 : i32
    %c0_i32_0 = arith.constant 0 : i32
    %c0_i32_1 = arith.constant 0 : i32
    return %c0_i32, %c0_i32_0 : i32, i32
  }
  func.func @transform_3(%arg0: i32) -> (i32, i32) {
    %c0_i32 = arith.constant 0 : i32
    %c0_i32_0 = arith.constant 0 : i32
    %c0_i32_1 = arith.constant 0 : i32
    return %c0_i32, %c0_i32_0 : i32, i32
  }
  func.func @transform_4(%arg0: i32) -> (i32, i32, i32) {
    %c0_i32 = arith.constant 0 : i32
    %c0_i32_0 = arith.constant 0 : i32
    %c0_i32_1 = arith.constant 0 : i32
    return %arg0, %c0_i32, %c0_i32_0 : i32, i32, i32
  }
}

</mosaic_0001>

<bundles_post_ra>
// kernel: conv_2d_forward.1
= control target key start
LH: loop header
LB: loop body
LE: loop exit
PB: predicated region body
PF: predicated region fallthrough
CT: control target
= control target key end

     0   :  { %s923_s15 = smov 0   ;;  %s1171_s0 = inlined_call_operand.vmem [shape: f32[2,135,64], index: 0, kind: input, shape index: {}]   ;;  %s1172_s1 = inlined_call_operand.vmem [shape: f32[64,128], index: 1, kind: input, shape index: {}]   ;;  %s1173_s2 = inlined_call_operand.vmem [shape: f32[1,128], index: 2, kind: input, shape index: {}]   ;;  %s1174_s3 = inlined_call_operand.vmem [shape: f32[90,135], index: 3, kind: input, shape index: {}]   ;;  %s1175_s4 = inlined_call_operand.vmem [shape: f32[2,90,128], index: 4, kind: output, shape index: {}]  }
   0x1 LB: > { %s706_s16 = sadd.s32 4294967295, %s893_s15   ;;  %p710_p0 = scmp.ge.s32.totalorder %s893_s15, 1  ;;  %s893_s15 = sphi %s923_s15, %s14_s15  }
   0x2   : > { %p162_p1 = scmp.lt.s32.totalorder %s893_s15, 3 }
   0x4   : > { %p163_p2 = pnand %p710_p0, %p162_p1 }
   0x5   : > { %v215_v0 = vld [vmem:[%s1172_s1] sm:$0xff] (!%p163_p2)  ;;  %v216_v1 = vld [vmem:[%s1172_s1 + $0x8] sm:$0xff] (!%p163_p2)  ;;  %v217_v2 = vld [vmem:[%s1172_s1 + $0x10] sm:$0xff] (!%p163_p2)  ;;  %v895_v3 = vmov (!%p163_p2), 0.0|0.0   ;;  %vm896_vm0 = vmmov (!%p163_p2), 0   ;;  %v897_v6 = vmov (!%p163_p2), 0.0  }
   0x6   : > { %166 = sbr.rel (%p163_p2) target bundleno = 563 (0x233), region = 36  ;;  %838 = vmatprep.subr.bf16.mxu0 (!%p163_p2), %v895_v3  ;;  %v839_v4 = vpack.c.bf16 (!%p163_p2), %v216_v1, %v215_v0  ;;  %v218_v5 = vld [vmem:[%s1172_s1 + $0x18] sm:$0xff] (!%p163_p2)  ;;  %787 = vmatprep.mubr.msk.f32.mxu0 (!%p163_p2), %vm896_vm0, %v897_v6  ;;  %p188_p3 = scmp.lt.s32.totalorder (!%p163_p2), %s706_s16, 1  ;;  %v219_v8 = vld [vmem:[%s1172_s1 + $0x20] sm:$0xff] (!%p163_p2)  ;;  %v220_v9 = vld [vmem:[%s1172_s1 + $0x28] sm:$0xff] (!%p163_p2)  ;;  %vm230_vm1 = vcmask (!%p163_p2), 523264  }
   0x7   : > { %850 = vmatprep.subr.bf16.mxu1 (!%p163_p2), %v895_v3  ;;  %v842_v7 = vpack.c.bf16 (!%p163_p2), %v218_v5, %v217_v2  ;;  %v845_v10 = vpack.c.bf16 (!%p163_p2), %v220_v9, %v219_v8  ;;  %v221_v11 = vld [vmem:[%s1172_s1 + $0x30] sm:$0xff] (!%p163_p2)  ;;  %v222_v12 = vld [vmem:[%s1172_s1 + $0x38] sm:$0xff] (!%p163_p2)  ;;  %v450_v31 = vld [vmem:[%s1174_s3 + $0x8] sm:$0xff] (!%p163_p2)  ;;  %vm473_vm2 = vcmask (!%p163_p2), 56320   ;;  %vm510_vm3 = vcmask (!%p163_p2), 1046528  }
   0x8   : > { %840 = vmatpush3.bf16.msra.mxu0 (!%p163_p2), %v839_v4  ;;  %v848_v13 = vpack.c.bf16 (!%p163_p2), %v222_v12, %v221_v11  ;;  %732 = vmatprep.mubr.msk.f32.mxu1 (!%p163_p2), %vm473_vm2, %v450_v31  ;;  %v1043_v32 = vld [vmem:[%s1173_s2] ss:$0 sm:$0xff] (!%p163_p2) }
   0x9   : > { %841 = vmatprep.subr.bf16.mxu0 (!%p163_p2), %v895_v3 }
   0xc   : > { %843 = vmatpush3.bf16.msra.mxu0 (!%p163_p2), %v842_v7 }
   0xd   : > { %s1177_s16 = smov (!%p188_p3, %s706_s16), 1  ;;  %844 = vmatprep.subr.bf16.mxu0 %v895_v3 }
   0xe   : > { %s874_s7 = smul.u32 136, %s1177_s16 }
   0xf   : > { %s875_s13 = smul.u32 96, %s1177_s16 }
  0x10   : > { %846 = vmatpush3.bf16.msra.mxu0 %v845_v10  ;;  %s968_s10 = scalar_lea.vmem %s1171_s0, %s874_s7 }
  0x11   : > { %847 = vmatprep.subr.bf16.mxu0 %v895_v3  ;;  %v198_v14 = vld [vmem:[%s968_s10] sm:$0xff]  ;;  %v199_v15 = vld [vmem:[%s968_s10 + $0x8] sm:$0xff]  ;;  %v200_v16 = vld [vmem:[%s968_s10 + $0x10] sm:$0xff]  ;;  %s1154_s18 = scalar_lea.vmem %s1175_s4, %s875_s13 }
  0x12   : > { %v201_v17 = vld [vmem:[%s968_s10 + $0x18] sm:$0xff]  ;;  %v202_v18 = vld [vmem:[%s968_s10 + $0x20] sm:$0xff]  ;;  %v203_v19 = vld [vmem:[%s968_s10 + $0x28] sm:$0xff] }
  0x13   : > { %v204_v20 = vld [vmem:[%s968_s10 + $0x30] sm:$0xff]  ;;  %v205_v21 = vld [vmem:[%s968_s10 + $0x38] sm:$0xff]  ;;  %v206_v22 = vld [vmem:[%s968_s10 + $0x40] sm:$0xff] }
  0x14   : > { %849 = vmatpush3.bf16.msra.mxu0 %v848_v13  ;;  %v207_v23 = vld [vmem:[%s968_s10 + $0x48] sm:$0xff]  ;;  %v208_v24 = vld [vmem:[%s968_s10 + $0x50] sm:$0xff]  ;;  %v209_v25 = vld [vmem:[%s968_s10 + $0x58] sm:$0xff] }
  0x15   : > { %v210_v26 = vld [vmem:[%s968_s10 + $0x60] sm:$0xff]  ;;  %v211_v27 = vld [vmem:[%s968_s10 + $0x68] sm:$0xff]  ;;  %v212_v28 = vld [vmem:[%s968_s10 + $0x70] sm:$0xff] }
  0x16   : > { %v213_v29 = vld [vmem:[%s968_s10 + $0x78] sm:$0xff]  ;;  %v214_v30 = vld [vmem:[%s968_s10 + $0x80] sm:$0x7f] }
  0x17   : > { %788 = vmatmul.mubr.msk.f32.vlgmr.msra.gmra.mrb[0].mxu0 %vm230_vm1, %v198_v14 }
  0x18   : > { %790 = vmatprep.mubr.msk.f32.mxu0 %vm896_vm0, %v897_v6 }
  0x1b   : > { %791 = vmatmul.mubr.msk.f32.gmra.mrb[2].mxu0 %vm230_vm1, %v199_v15 }
  0x1c   : > { %793 = vmatprep.mubr.msk.f32.mxu0 %vm896_vm0, %v897_v6 }
  0x1f   : > { %794 = vmatmul.mubr.msk.f32.gmra.mrb[4].mxu0 %vm230_vm1, %v200_v16 }
  0x20   : > { %796 = vmatprep.mubr.msk.f32.mxu0 %vm896_vm0, %v897_v6 }
  0x23   : > { %797 = vmatmul.mubr.msk.f32.gmra.mrb[6].mxu0 %vm230_vm1, %v201_v17 }
  0x24   : > { %799 = vmatprep.mubr.msk.f32.mxu0 %vm896_vm0, %v897_v6 }
  0x27   : > { %800 = vmatmul.mubr.msk.f32.gmra.mrb[8].mxu0 %vm230_vm1, %v202_v18 }
  0x28   : > { %802 = vmatprep.mubr.msk.f32.mxu0 %vm896_vm0, %v897_v6 }
  0x2b   : > { %803 = vmatmul.mubr.msk.f32.gmra.mrb[10].mxu0 %vm230_vm1, %v203_v19 }
  0x2c   : > { %805 = vmatprep.mubr.msk.f32.mxu0 %vm896_vm0, %v897_v6 }
  0x2f   : > { %806 = vmatmul.mubr.msk.f32.gmra.mrb[12].mxu0 %vm230_vm1, %v204_v20 }
  0x30   : > { %808 = vmatprep.mubr.msk.f32.mxu0 %vm896_vm0, %v897_v6 }
  0x33   : > { %809 = vmatmul.mubr.msk.f32.gmra.mrb[14].mxu0 %vm230_vm1, %v205_v21 }
  0x34   : > { %811 = vmatprep.mubr.msk.f32.mxu0 %vm896_vm0, %v897_v6 }
  0x37   : > { %812 = vmatmul.mubr.msk.f32.gmra.mrb[16].mxu0 %vm230_vm1, %v206_v22 }
  0x38   : > { %814 = vmatprep.mubr.msk.f32.mxu0 %vm896_vm0, %v897_v6 }
  0x3b   : > { %815 = vmatmul.mubr.msk.f32.gmra.mrb[18].mxu0 %vm230_vm1, %v207_v23 }
  0x3c   : > { %817 = vmatprep.mubr.msk.f32.mxu0 %vm896_vm0, %v897_v6 }
  0x3f   : > { %818 = vmatmul.mubr.msk.f32.gmra.mrb[20].mxu0 %vm230_vm1, %v208_v24 }
  0x40   : > { %820 = vmatprep.mubr.msk.f32.mxu0 %vm896_vm0, %v897_v6 }
  0x43   : > { %821 = vmatmul.mubr.msk.f32.gmra.mrb[22].mxu0 %vm230_vm1, %v209_v25 }
  0x44   : > { %823 = vmatprep.mubr.msk.f32.mxu0 %vm896_vm0, %v897_v6 }
  0x47   : > { %824 = vmatmul.mubr.msk.f32.gmra.mrb[24].mxu0 %vm230_vm1, %v210_v26 }
  0x48   : > { %826 = vmatprep.mubr.msk.f32.mxu0 %vm896_vm0, %v897_v6 }
  0x4b   : > { %827 = vmatmul.mubr.msk.f32.gmra.mrb[26].mxu0 %vm230_vm1, %v211_v27 }
  0x4c   : > { %829 = vmatprep.mubr.msk.f32.mxu0 %vm896_vm0, %v897_v6 }
  0x4f   : > { %830 = vmatmul.mubr.msk.f32.gmra.mrb[28].mxu0 %vm230_vm1, %v212_v28 }
  0x50   : > { %832 = vmatprep.mubr.msk.f32.mxu0 %vm896_vm0, %v897_v6 }
  0x53   : > { %833 = vmatmul.mubr.msk.f32.gmra.mrb[30].mxu0 %vm230_vm1, %v213_v29 }
  0x54   : > { %835 = vmatprep.mubr.msk.f32.mxu0 %vm896_vm0, %v897_v6 }
  0x57   : > { %836 = vmatmul.mubr.msk.f32.gmra.mrb[32].mxu0 %vm230_vm1, %v214_v30 }
  0xea   : > { %v348_v33 = vpop.f32.mrb[0].mxu0 }
  0xeb   : > { %v789_v34 = vpop.f32.mrb[1].mxu0  ;;  %v349_v35 = vadd.f32 %v1043_v32, %v348_v33 }
  0xed   : > { %v432_v39 = vmax.f32 %v349_v35, 0.0 }
  0xee   : > { %v353_v36 = vpop.f32.mrb[2].mxu0 }
  0xef   : > { %v354_v37 = vadd.f32 %v1043_v32, %v353_v36  ;;  %v792_v38 = vpop.f32.mrb[3].mxu0 }
  0xf1   : > { %v433_v40 = vmax.f32 %v354_v37, 0.0 }
  0xf2   : > { %v358_v41 = vpop.f32.mrb[4].mxu0 }
  0xf3   : > { %v795_v42 = vpop.f32.mrb[5].mxu0  ;;  %v851_v43 = vpack.c.bf16 %v433_v40, %v432_v39  ;;  %v359_v44 = vadd.f32 %v1043_v32, %v358_v41 }
  0xf5   : > { %852 = vmatpush1.bf16.msra.mxu1 %v851_v43  ;;  %v434_v48 = vmax.f32 %v359_v44, 0.0 }
  0xf6   : > { %v363_v45 = vpop.f32.mrb[6].mxu0  ;;  %853 = vmatprep.subr.bf16.mxu1 %v895_v3 }
  0xf7   : > { %v364_v46 = vadd.f32 %v1043_v32, %v363_v45  ;;  %v798_v47 = vpop.f32.mrb[7].mxu0 }
  0xf9   : > { %v435_v49 = vmax.f32 %v364_v46, 0.0 }
  0xfa   : > { %v368_v50 = vpop.f32.mrb[8].mxu0 }
  0xfb   : > { %v854_v51 = vpack.c.bf16 %v435_v49, %v434_v48  ;;  %v801_v52 = vpop.f32.mrb[9].mxu0  ;;  %v369_v53 = vadd.f32 %v1043_v32, %v368_v50  ;;  %v449_v48 = vld [vmem:[%s1174_s3] sm:$0xff]  ;;  %v456_v50 = vld [vmem:[%s1174_s3 + $0x38] sm:$0xff] }
  0xfc   : > { %v453_v49 = vld [vmem:[%s1174_s3 + $0x20] sm:$0xff]  ;;  %v458_v52 = vld [vmem:[%s1174_s3 + $0x48] sm:$0xff] }
  0xfd   : > { %855 = vmatpush1.bf16.msra.mxu1 %v854_v51  ;;  %v436_v57 = vmax.f32 %v369_v53, 0.0  ;;  %v455_v51 = vld [vmem:[%s1174_s3 + $0x30] sm:$0xff]  ;;  %v457_v53 = vld [vmem:[%s1174_s3 + $0x40] sm:$0xff] }
  0xfe   : > { %v373_v54 = vpop.f32.mrb[10].mxu0  ;;  %856 = vmatprep.subr.bf16.mxu1 %v895_v3 }
  0xff   : > { %v374_v55 = vadd.f32 %v1043_v32, %v373_v54  ;;  %v804_v56 = vpop.f32.mrb[11].mxu0  ;;  %v460_v54 = vld [vmem:[%s1174_s3 + $0x58] sm:$0xff] }
 0x100   : > { %v462_v56 = vld [vmem:[%s1174_s3 + $0x68] sm:$0xff] }
 0x101   : > { %v437_v58 = vmax.f32 %v374_v55, 0.0  ;;  %v459_v55 = vld [vmem:[%s1174_s3 + $0x50] sm:$0xff] }
 0x102   : > { %v378_v59 = vpop.f32.mrb[12].mxu0 }
 0x103   : > { %v857_v60 = vpack.c.bf16 %v437_v58, %v436_v57  ;;  %v807_v61 = vpop.f32.mrb[13].mxu0  ;;  %v379_v62 = vadd.f32 %v1043_v32, %v378_v59  ;;  %v461_v57 = vld [vmem:[%s1174_s3 + $0x60] sm:$0xff]  ;;  %v464_v58 = vld [vmem:[%s1174_s3 + $0x78] sm:$0xff]  ;;  %v463_v59 = vld [vmem:[%s1174_s3 + $0x70] sm:$0xff] }
 0x104   : > { %v465_v61 = vld [vmem:[%s1174_s3 + $0x80] sm:$0xff] }
 0x105   : > { %858 = vmatpush1.bf16.msra.mxu1 %v857_v60  ;;  %v438_v2 = vmax.f32 %v379_v62, 0.0  ;;  %v466_v60 = vld [vmem:[%s1174_s3 + $0x88] sm:$0xff]  ;;  %v468_v62 = vld [vmem:[%s1174_s3 + $0x98] sm:$0xff] }
 0x106   : > { %v383_v63 = vpop.f32.mrb[14].mxu0  ;;  %859 = vmatprep.subr.bf16.mxu1 %v895_v3 }
 0x107   : > { %v384_v0 = vadd.f32 %v1043_v32, %v383_v63  ;;  %v810_v1 = vpop.f32.mrb[15].mxu0  ;;  %v467_v63 = vld [vmem:[%s1174_s3 + $0x90] sm:$0xff] }
 0x108   : > { %v469_v1 = vld [vmem:[%s1174_s3 + $0xa0] sm:$0xff] }
 0x109   : > { %v439_v4 = vmax.f32 %v384_v0, 0.0  ;;  %v470_v0 = vld [vmem:[%s1174_s3 + $0xa8] sm:$0xff] }
 0x10a   : > { %v388_v5 = vpop.f32.mrb[16].mxu0 }
 0x10b   : > { %v860_v7 = vpack.c.bf16 %v439_v4, %v438_v2  ;;  %v813_v8 = vpop.f32.mrb[17].mxu0  ;;  %v389_v9 = vadd.f32 %v1043_v32, %v388_v5  ;;  %v472_v2 = vld [vmem:[%s1174_s3 + $0xb8] sm:$0x3]  ;;  %v471_v4 = vld [vmem:[%s1174_s3 + $0xb0] sm:$0x3] }
 0x10d   : > { %861 = vmatpush1.bf16.msra.mxu1 %v860_v7  ;;  %v440_v13 = vmax.f32 %v389_v9, 0.0 }
 0x10e   : > { %v393_v10 = vpop.f32.mrb[18].mxu0  ;;  %862 = vmatprep.subr.bf16.mxu1 %v895_v3 }
 0x10f   : > { %v394_v11 = vadd.f32 %v1043_v32, %v393_v10  ;;  %v816_v12 = vpop.f32.mrb[19].mxu0 }
 0x111   : > { %v441_v14 = vmax.f32 %v394_v11, 0.0 }
 0x112   : > { %v398_v15 = vpop.f32.mrb[20].mxu0 }
 0x113   : > { %v863_v16 = vpack.c.bf16 %v441_v14, %v440_v13  ;;  %v819_v17 = vpop.f32.mrb[21].mxu0  ;;  %v399_v18 = vadd.f32 %v1043_v32, %v398_v15 }
 0x115   : > { %864 = vmatpush1.bf16.msra.mxu1 %v863_v16  ;;  %v442_v22 = vmax.f32 %v399_v18, 0.0 }
 0x116   : > { %v403_v19 = vpop.f32.mrb[22].mxu0  ;;  %865 = vmatprep.subr.bf16.mxu1 %v895_v3 }
 0x117   : > { %v404_v20 = vadd.f32 %v1043_v32, %v403_v19  ;;  %v822_v21 = vpop.f32.mrb[23].mxu0 }
 0x119   : > { %v443_v23 = vmax.f32 %v404_v20, 0.0 }
 0x11a   : > { %v408_v24 = vpop.f32.mrb[24].mxu0 }
 0x11b   : > { %v866_v25 = vpack.c.bf16 %v443_v23, %v442_v22  ;;  %v825_v26 = vpop.f32.mrb[25].mxu0  ;;  %v409_v27 = vadd.f32 %v1043_v32, %v408_v24 }
 0x11d   : > { %867 = vmatpush1.bf16.msra.mxu1 %v866_v25  ;;  %v444_v31 = vmax.f32 %v409_v27, 0.0 }
 0x11e   : > { %v413_v28 = vpop.f32.mrb[26].mxu0  ;;  %868 = vmatprep.subr.bf16.mxu1 %v895_v3 }
 0x11f   : > { %v414_v29 = vadd.f32 %v1043_v32, %v413_v28  ;;  %v828_v30 = vpop.f32.mrb[27].mxu0 }
 0x121   : > { %v445_v33 = vmax.f32 %v414_v29, 0.0 }
 0x122   : > { %v418_v34 = vpop.f32.mrb[28].mxu0 }
 0x123   : > { %v869_v35 = vpack.c.bf16 %v445_v33, %v444_v31  ;;  %v831_v36 = vpop.f32.mrb[29].mxu0  ;;  %v419_v37 = vadd.f32 %v1043_v32, %v418_v34 }
 0x125   : > { %870 = vmatpush1.bf16.msra.mxu1 %v869_v35  ;;  %v446_v41 = vmax.f32 %v419_v37, 0.0 }
 0x126   : > { %v423_v38 = vpop.f32.mrb[30].mxu0  ;;  %871 = vmatprep.subr.bf16.mxu1 %v895_v3  ;;  %v452_v3 = vld [vmem:[%s1174_s3 + $0x18] sm:$0xff] }
 0x127   : > { %v424_v39 = vadd.f32 %v1043_v32, %v423_v38  ;;  %v834_v40 = vpop.f32.mrb[31].mxu0 }
 0x129   : > { %v447_v42 = vmax.f32 %v424_v39, 0.0 }
 0x12a   : > { %v428_v43 = vpop.f32.mrb[32].mxu0 }
 0x12b   : > { %v872_v44 = vpack.c.bf16 %v447_v42, %v446_v41  ;;  %v429_v45 = vadd.f32 %v1043_v32, %v428_v43  ;;  %v837_v46 = vpop.f32.mrb[33].mxu0  ;;  %v451_v32 = vld [vmem:[%s1174_s3 + $0x10] sm:$0xff] }
 0x12d   : > { %v448_v47 = vmax.f32 %v429_v45, 0.0  ;;  %873 = vmatpush1.bf16.msra.mxu1 %v872_v44 }
 0x12e   : > { %546 = vmatprep.subr.mxu1 %v897_v6  ;;  %v454_v6 = vld [vmem:[%s1174_s3 + $0x28] sm:$0xff] }
 0x131   : > { %731 = vmatpush1.msk.msra.mxu1 %vm510_vm3, %v448_v47 }
 0x132   : > { %579 = vmatmul.mubr.f32.vlgmr.msra.gmra.mrb[0].mxu1 %v449_v48 }
 0x133   : > { %733 = vmatprep.mubr.msk.f32.mxu1 %vm473_vm2, %v452_v3 }
 0x136   : > { %584 = vmatmul.mubr.f32.gmra.mrb[2].mxu1 %v451_v32 }
 0x137   : > { %734 = vmatprep.mubr.msk.f32.mxu1 %vm473_vm2, %v454_v6 }
 0x13a   : > { %589 = vmatmul.mubr.f32.gmra.mrb[4].mxu1 %v453_v49 }
 0x13b   : > { %735 = vmatprep.mubr.msk.f32.mxu1 %vm473_vm2, %v456_v50 }
 0x13e   : > { %594 = vmatmul.mubr.f32.gmra.mrb[6].mxu1 %v455_v51 }
 0x13f   : > { %736 = vmatprep.mubr.msk.f32.mxu1 %vm473_vm2, %v458_v52 }
 0x142   : > { %599 = vmatmul.mubr.f32.gmra.mrb[8].mxu1 %v457_v53 }
 0x143   : > { %737 = vmatprep.mubr.msk.f32.mxu1 %vm473_vm2, %v460_v54 }
 0x146   : > { %604 = vmatmul.mubr.f32.gmra.mrb[10].mxu1 %v459_v55 }
 0x147   : > { %738 = vmatprep.mubr.msk.f32.mxu1 %vm473_vm2, %v462_v56 }
 0x14a   : > { %609 = vmatmul.mubr.f32.gmra.mrb[12].mxu1 %v461_v57 }
 0x14b   : > { %739 = vmatprep.mubr.msk.f32.mxu1 %vm473_vm2, %v464_v58 }
 0x14e   : > { %614 = vmatmul.mubr.f32.gmra.mrb[14].mxu1 %v463_v59 }
 0x14f   : > { %740 = vmatprep.mubr.msk.f32.mxu1 %vm473_vm2, %v466_v60 }
 0x152   : > { %619 = vmatmul.mubr.f32.gmra.mrb[16].mxu1 %v465_v61 }
 0x153   : > { %741 = vmatprep.mubr.msk.f32.mxu1 %vm473_vm2, %v468_v62 }
 0x156   : > { %624 = vmatmul.mubr.f32.gmra.mrb[18].mxu1 %v467_v63 }
 0x157   : > { %742 = vmatprep.mubr.msk.f32.mxu1 %vm473_vm2, %v470_v0 }
 0x15a   : > { %629 = vmatmul.mubr.f32.gmra.mrb[20].mxu1 %v469_v1 }
 0x15b   : > { %743 = vmatprep.mubr.msk.f32.mxu1 %vm473_vm2, %v472_v2 }
 0x15e   : > { %634 = vmatmul.mubr.f32.gmra.mrb[22].mxu1 %v471_v4 }
 0x205   : > { %v580_v5 = vpop.f32.mrb[0].mxu1 }
 0x206   : > { %639 = vst [vmem:[%s1154_s18] sm:$0xff] %v580_v5  ;;  %v582_v7 = vpop.f32.mrb[1].mxu1 }
 0x209   : > { %v585_v8 = vpop.f32.mrb[2].mxu1 }
 0x20a   : > { %640 = vst [vmem:[%s1154_s18 + $0x8] sm:$0xff] %v585_v8  ;;  %v587_v9 = vpop.f32.mrb[3].mxu1 }
 0x20d   : > { %v590_v10 = vpop.f32.mrb[4].mxu1 }
 0x20e   : > { %641 = vst [vmem:[%s1154_s18 + $0x10] sm:$0xff] %v590_v10  ;;  %v592_v11 = vpop.f32.mrb[5].mxu1 }
 0x211   : > { %v595_v12 = vpop.f32.mrb[6].mxu1 }
 0x212   : > { %642 = vst [vmem:[%s1154_s18 + $0x18] sm:$0xff] %v595_v12  ;;  %v597_v13 = vpop.f32.mrb[7].mxu1 }
 0x215   : > { %v600_v14 = vpop.f32.mrb[8].mxu1 }
 0x216   : > { %643 = vst [vmem:[%s1154_s18 + $0x20] sm:$0xff] %v600_v14  ;;  %v602_v15 = vpop.f32.mrb[9].mxu1 }
 0x219   : > { %v605_v16 = vpop.f32.mrb[10].mxu1 }
 0x21a   : > { %644 = vst [vmem:[%s1154_s18 + $0x28] sm:$0xff] %v605_v16  ;;  %v607_v17 = vpop.f32.mrb[11].mxu1 }
 0x21d   : > { %v610_v18 = vpop.f32.mrb[12].mxu1 }
 0x21e   : > { %645 = vst [vmem:[%s1154_s18 + $0x30] sm:$0xff] %v610_v18  ;;  %v612_v19 = vpop.f32.mrb[13].mxu1 }
 0x221   : > { %v615_v20 = vpop.f32.mrb[14].mxu1 }
 0x222   : > { %646 = vst [vmem:[%s1154_s18 + $0x38] sm:$0xff] %v615_v20  ;;  %v617_v21 = vpop.f32.mrb[15].mxu1 }
 0x225   : > { %v620_v22 = vpop.f32.mrb[16].mxu1 }
 0x226   : > { %647 = vst [vmem:[%s1154_s18 + $0x40] sm:$0xff] %v620_v22  ;;  %v622_v23 = vpop.f32.mrb[17].mxu1 }
 0x229   : > { %v625_v24 = vpop.f32.mrb[18].mxu1 }
 0x22a   : > { %648 = vst [vmem:[%s1154_s18 + $0x48] sm:$0xff] %v625_v24  ;;  %v627_v25 = vpop.f32.mrb[19].mxu1 }
 0x22d   : > { %v630_v26 = vpop.f32.mrb[20].mxu1 }
 0x22e   : > { %649 = vst [vmem:[%s1154_s18 + $0x50] sm:$0xff] %v630_v26  ;;  %v632_v27 = vpop.f32.mrb[21].mxu1 }
 0x231   : > { %v635_v28 = vpop.f32.mrb[22].mxu1 }
 0x232   : > { %650 = vst [vmem:[%s1154_s18 + $0x58] sm:$0x3] %v635_v28  ;;  %v637_v29 = vpop.f32.mrb[23].mxu1 }
 0x233 PF: > { %s14_s15 = sadd.s32 1, %s893_s15  }
 0x234   : > { %p11_p4 = scmp.ge.s32.totalorder %s14_s15, 4  }
 0x236   :  { %13 = sbr.rel (!%p11_p4) target bundleno = 1 (0x1), region = 66 }

</bundles_post_ra>
